<compile_context>
chip_gen: v7x
topology: tpu7x:2x2x1
jax: 0.10.0
libtpu: 0.0.40
codegen_flags: <defaults>
</compile_context>

<pallas_src>
import functools
import math

import jax
import jax.numpy as jnp
from jax.experimental import pallas as pl
from jax.experimental.pallas import tpu as pltpu

# bias_act.activation_funcs default gains for the supported activations.
_ACT_GAIN = {
    "linear": 1.0,
    "relu": math.sqrt(2.0),
    "lrelu": math.sqrt(2.0),
    "tanh": 1.0,
    "sigmoid": 1.0,
}

_LANE = 128
_SUBLANE = 8


def _round_up(x, m):
    return ((x + m - 1) // m) * m


@functools.lru_cache(maxsize=1)
def _hw_caps():
    """Per-generation tile caps and scoped-VMEM limit."""
    try:
        vmem_cap = int(pltpu.get_tpu_info().vmem_capacity_bytes)
    except Exception:
        # Unknown chip / interpret mode: conservative caps, default scoped VMEM.
        return {"max_tm": 256, "max_tk": 512, "max_tn": 512, "vmem_limit": None}
    if vmem_cap >= 96 * (1 << 20):
        # v5e / v6e: 128 MiB physical VMEM per core.
        return {"max_tm": 512, "max_tk": 1024, "max_tn": 1024,
                "vmem_limit": 64 * (1 << 20)}
    # v7x: 64 MiB per TensorCore — keep multi-buffered tiles well under half.
    return {"max_tm": 256, "max_tk": 1024, "max_tn": 512,
            "vmem_limit": 40 * (1 << 20)}


def _padded_dims(K, N):
    """Kernel-side parameter padding (must agree with _build_fc_forward)."""
    max_tk = _hw_caps()["max_tk"]
    K_pad = K if K <= max_tk else _round_up(K, _LANE)
    N_pad = _round_up(N, _LANE)
    return K_pad, N_pad


def _apply_activation(y, activation, act_gain):
    g = float(act_gain)
    if activation == "linear":
        out = y
    elif activation == "relu":
        out = jnp.maximum(y, 0.0)
    elif activation == "lrelu":
        # gain fused into the select: one cmp + select + mul.
        return y * jnp.where(y >= 0.0, g, 0.2 * g)
    elif activation == "tanh":
        out = jnp.tanh(y)          # EUP slot
    elif activation == "sigmoid":
        out = jax.nn.sigmoid(y)    # EUP slot
    else:
        raise ValueError(f"unsupported activation: {activation}")
    if g != 1.0:
        out = out * g
    return out


def _make_kernel(activation, act_gain, has_bias, precision):
    def kernel(*refs):
        if has_bias:
            x_ref, w_ref, b_ref, o_ref, acc_ref = refs
        else:
            x_ref, w_ref, o_ref, acc_ref = refs
        k = pl.program_id(2)

        @pl.when(k == 0)
        def _():
            if has_bias:
                # Fold the bias into the accumulator init: saves the epilogue add.
                acc_ref[...] = jnp.broadcast_to(
                    b_ref[...].astype(jnp.float32), acc_ref.shape)
            else:
                acc_ref[...] = jnp.zeros_like(acc_ref)

        # x: (tm, tk), w: (tk, tn) — pre-transposed, pre-scaled. MXU, f32 acc.
        acc_ref[...] += jnp.dot(
            x_ref[...], w_ref[...],
            preferred_element_type=jnp.float32,
            precision=precision)

        @pl.when(k == pl.num_programs(2) - 1)
        def _():
            y = _apply_activation(acc_ref[...], activation, act_gain)
            o_ref[...] = y.astype(o_ref.dtype)

    return kernel


@functools.lru_cache(maxsize=None)
def _build_fc_forward(M, K, N, K_pad, N_pad, x_dtype, w_dtype, has_bias,
                      activation, act_gain):
    """Builds a jitted forward(x, w[, b]) for fixed shapes / dtypes."""
    caps = _hw_caps()
    max_tm, max_tk, max_tn = caps["max_tm"], caps["max_tk"], caps["max_tn"]

    # ---- K tiling: one full-K block when it fits, else 128-granular tiles. ----
    if K_pad <= max_tk:
        tk = K_pad
    else:
        tk = next(t for t in range(max_tk, 0, -_LANE) if K_pad % t == 0)

    # ---- M tiling: largest tile with <=12.5% padding waste. ----
    M_pad8 = _round_up(M, _SUBLANE)
    if M_pad8 <= max_tm:
        tm = M_pad8
    else:
        ladder = []
        t = max_tm
        while t >= _SUBLANE:
            ladder.append(t)
            t //= 2
        tm = next((t for t in ladder if _round_up(M, t) - M <= M // 8), _SUBLANE)
    M_pad = _round_up(M, tm)

    # ---- N tiling: largest 128-multiple tile dividing N_pad (lane-dense stores).
    tn = next(t for t in range(min(max_tn, N_pad), 0, -_LANE) if N_pad % t == 0)
    # Megacore: guarantee >=2 steps along the "parallel" axes where possible
    # (v7x has 2 TensorCores/chip; a (1,1,K) grid runs on one core).
    if (M_pad // tm) * (N_pad // tn) == 1 and N_pad >= 2 * _LANE:
        tn = next(t for t in range(tn - _LANE, 0, -_LANE) if N_pad % t == 0)

    grid = (M_pad // tm, N_pad // tn, K_pad // tk)

    compute_dtype = jnp.dtype(w_dtype)
    out_dtype = jnp.dtype(x_dtype)
    # f32 params: exact contraction. bf16 params: native MXU path, default precision.
    precision = (jax.lax.Precision.HIGHEST
                 if compute_dtype == jnp.dtype(jnp.float32) else None)

    kernel = _make_kernel(activation, act_gain, has_bias, precision)

    # Small-batch layers are pure weight-streaming (HBM-bound): deepen the weight
    # pipeline so DMA latency hides behind the tiny MXU work.
    stream_weight = (M_pad <= 64 and grid[1] * grid[2] >= 3)
    w_kwargs = dict(pipeline_mode=pl.Buffered(3)) if stream_weight else {}

    in_specs = [
        pl.BlockSpec((tm, tk), lambda i, j, k: (i, k)),                   # x
        pl.BlockSpec((tk, tn), lambda i, j, k: (k, j), **w_kwargs),       # w (K, N)
    ]
    if has_bias:
        in_specs.append(pl.BlockSpec((1, tn), lambda i, j, k: (0, j)))    # bias

    cp_kwargs = dict(dimension_semantics=("parallel", "parallel", "arbitrary"))
    if caps["vmem_limit"] is not None:
        cp_kwargs["vmem_limit_bytes"] = caps["vmem_limit"]

    call = pl.pallas_call(
        kernel,
        out_shape=jax.ShapeDtypeStruct((M_pad, N_pad), out_dtype),
        grid_spec=pltpu.PrefetchScalarGridSpec(
            num_scalar_prefetch=0,
            grid=grid,
            in_specs=in_specs,
            out_specs=pl.BlockSpec((tm, tn), lambda i, j, k: (i, j)),
            scratch_shapes=[pltpu.VMEM((tm, tn), jnp.float32)],
        ),
        compiler_params=pltpu.CompilerParams(**cp_kwargs),
    )

    @jax.jit
    def forward(x, *params):
        if x.dtype != compute_dtype:
            x = x.astype(compute_dtype)
        if (M_pad, K_pad) != (M, K):
            x = jnp.pad(x, ((0, M_pad - M), (0, K_pad - K)))
        out = call(x, *params)
        if (M_pad, N_pad) != (M, N):
            out = out[:M, :N]
        return out

    return forward


class FullyConnectedLayer:
    """JAX/Pallas forward-pass port of the PyTorch FullyConnectedLayer."""

    def __init__(self, in_features, out_features, *, bias=True, activation="linear",
                 lr_multiplier=1.0, weight_std_init=1.0, bias_init=0.0,
                 param_dtype=jnp.float32, key=None):
        assert activation in _ACT_GAIN
        if key is None:
            key = jax.random.PRNGKey(0)
        self.in_features = in_features
        self.out_features = out_features
        self.activation = activation
        # Parameters exactly as the torch module stores them (kept for reference).
        self.weight = (jax.random.normal(key, (out_features, in_features), jnp.float32)
                       * weight_std_init / lr_multiplier)
        self.weight_gain = lr_multiplier / math.sqrt(in_features)
        if bias:
            self.bias = jnp.full((out_features,), bias_init / lr_multiplier, jnp.float32)
            self.bias_gain = lr_multiplier
        else:
            self.bias = None
            self.bias_gain = 1.0

        # ----- kernel-side parameter copies (forward/inference only) -----
        # Pre-scaled by the gains, pre-transposed to (K, N), zero-padded so N is a
        # multiple of 128 (lane-dense stores) and K is 128-granular only when tiled.
        # NOTE: folding the gains changes gradient scaling vs. the original
        # lr_multiplier trick; fine for the forward pass / inference.
        K_pad, N_pad = _padded_dims(in_features, out_features)
        w_t = (self.weight * self.weight_gain).T                      # (K, N)
        w_t = jnp.pad(w_t, ((0, K_pad - in_features), (0, N_pad - out_features)))
        self._w_kernel = w_t.astype(param_dtype)                      # f32 or bf16
        if bias:
            b = (self.bias * self.bias_gain).reshape(1, out_features)
            self._b_kernel = jnp.pad(
                b, ((0, 0), (0, N_pad - out_features))).astype(jnp.float32)
        else:
            self._b_kernel = None
        self._K_pad = K_pad
        self._N_pad = N_pad

    def __call__(self, x):
        assert x.ndim == 2 and x.shape[1] == self.in_features
        M = x.shape[0]
        fwd = _build_fc_forward(
            M, self.in_features, self.out_features, self._K_pad, self._N_pad,
            jnp.dtype(x.dtype), jnp.dtype(self._w_kernel.dtype),
            self._b_kernel is not None, self.activation,
            float(_ACT_GAIN[self.activation]))
        if self._b_kernel is not None:
            return fwd(x, self._w_kernel, self._b_kernel)
        return fwd(x, self._w_kernel)


def _reference(layer, x):
    w = layer.weight * layer.weight_gain
    y = jnp.dot(x.astype(jnp.float32), w.T, precision=jax.lax.Precision.HIGHEST)
    if layer.bias is not None:
        y = y + layer.bias * layer.bias_gain
    act = layer.activation
    if act == "relu":
        y = jnp.maximum(y, 0.0)
    elif act == "lrelu":
        y = jnp.where(y >= 0, y, 0.2 * y)
    elif act == "tanh":
        y = jnp.tanh(y)
    elif act == "sigmoid":
        y = jax.nn.sigmoid(y)
    return y * _ACT_GAIN[act]


if __name__ == "__main__":
    key = jax.random.PRNGKey(0)
    k1, k2, k3, k4, k5, k6, kx1, kx2, kx3, kx4 = jax.random.split(key, 10)

    # 1) linear + bias (addmm path) — small shapes, single-block grid.
    batch, in_f, out_f = 8, 32, 64
    x = jax.random.normal(kx1, (batch, in_f), jnp.float32)
    fc_lin = FullyConnectedLayer(in_f, out_f, activation="linear",
                                 lr_multiplier=0.5, bias_init=0.1, key=k1)
    out_lin = jax.block_until_ready(fc_lin(x))
    ref_lin = _reference(fc_lin, x)
    assert out_lin.shape == (batch, out_f)
    assert jnp.allclose(out_lin, ref_lin, atol=1e-5, rtol=1e-5)

    # 2) lrelu + bias (bias_act path).
    fc_lrelu = FullyConnectedLayer(in_f, out_f, activation="lrelu", key=k2)
    out_lrelu = jax.block_until_ready(fc_lrelu(x))
    ref_lrelu = _reference(fc_lrelu, x)
    assert out_lrelu.shape == (batch, out_f)
    assert jnp.allclose(out_lrelu, ref_lrelu, atol=1e-5, rtol=1e-5)

    # 3) no-bias relu — exercises the bias-free kernel (no bias DMA at all).
    fc_nb = FullyConnectedLayer(in_f, out_f, bias=False, activation="relu", key=k3)
    out_nb = jax.block_until_ready(fc_nb(x))
    ref_nb = _reference(fc_nb, x)
    assert jnp.allclose(out_nb, ref_nb, atol=1e-5, rtol=1e-5)

    # 4) larger layer — exercises the fine-grained M/K/N padding + tiled grid.
    M2, K2, N2 = 300, 640, 320
    x2 = jax.random.normal(kx2, (M2, K2), jnp.float32)
    fc_big = FullyConnectedLayer(K2, N2, activation="lrelu", key=k4)
    out_big = jax.block_until_ready(fc_big(x2))
    ref_big = _reference(fc_big, x2)
    assert out_big.shape == (M2, N2)
    assert jnp.allclose(out_big, ref_big, atol=1e-3, rtol=1e-3)

    # 5) small-batch weight-streaming regime — K tiled on every generation,
    #    megacore N-split, Buffered(3) weight pipeline.
    M5, K5, N5 = 4, 2304, 768
    x5 = jax.random.normal(kx3, (M5, K5), jnp.float32)
    fc_ws = FullyConnectedLayer(K5, N5, activation="linear", bias_init=0.05, key=k5)
    out_ws = jax.block_until_ready(fc_ws(x5))
    ref_ws = _reference(fc_ws, x5)
    assert out_ws.shape == (M5, N5)
    assert jnp.allclose(out_ws, ref_ws, atol=1e-4, rtol=1e-4)

    # 6) bf16 compute path (v6e/v7x bf16-native MXU) — relaxed numerics by design.
    M6, K6, N6 = 64, 256, 256
    x6 = jax.random.normal(kx4, (M6, K6), jnp.float32)
    fc_bf = FullyConnectedLayer(K6, N6, activation="lrelu",
                                param_dtype=jnp.bfloat16, key=k6)
    out_bf = jax.block_until_ready(fc_bf(x6))
    ref_bf = _reference(fc_bf, x6)
    assert out_bf.shape == (M6, N6)
    assert out_bf.dtype == x6.dtype
    assert jnp.allclose(out_bf, ref_bf, atol=6e-2, rtol=6e-2)

    print("KERNEL_OK")
</pallas_src>

<mosaic_0001>
module attributes {stable_mosaic.version = 11 : i64} {
  func.func @kernel(%arg0: i32, %arg1: i32, %arg2: i32, %arg3: memref<8x32xf32, #tpu.memory_space<vmem>>, %arg4: memref<32x128xf32, #tpu.memory_space<vmem>>, %arg5: memref<1x128xf32, #tpu.memory_space<vmem>>, %arg6: memref<8x128xf32, #tpu.memory_space<vmem>>, %arg7: memref<8x128xf32, #tpu.memory_space<vmem>>) attributes {dimension_semantics = [#tpu.dimension_semantics<parallel>, #tpu.dimension_semantics<parallel>, #tpu.dimension_semantics<arbitrary>], iteration_bounds = array<i64: 1, 1, 1>, scalar_prefetch = 0 : i64, scratch_operands = 1 : i64, tpu.core_type = #tpu.core_type<tc>, window_params = [{transform_indices = @transform_0, window_bounds = array<i64: 8, 32>}, {transform_indices = @transform_1, window_bounds = array<i64: 32, 128>}, {transform_indices = @transform_2, window_bounds = array<i64: 1, 128>}, {transform_indices = @transform_3, window_bounds = array<i64: 8, 128>}]} {
    %c0_i32 = arith.constant 0 : i32
    %0 = arith.cmpi eq, %arg2, %c0_i32 : i32
    %1 = arith.extui %0 : i1 to i32
    %c0_i32_0 = arith.constant 0 : i32
    %2 = arith.cmpi ne, %1, %c0_i32_0 : i32
    scf.if %2 {
      %c0_10 = arith.constant 0 : index
      %c0_11 = arith.constant 0 : index
      %12 = vector.load %arg5[%c0_10, %c0_11] : memref<1x128xf32, #tpu.memory_space<vmem>>, vector<1x128xf32>
      %13 = vector.shape_cast %12 : vector<1x128xf32> to vector<1x128xf32>
      %14 = vector.broadcast %13 : vector<1x128xf32> to vector<8x128xf32>
      %c0_12 = arith.constant 0 : index
      %c0_13 = arith.constant 0 : index
      %15 = vector.load %arg7[%c0_12, %c0_13] : memref<8x128xf32, #tpu.memory_space<vmem>>, vector<8x128xf32>
      tpu.vector_store %arg7[%c0_12, %c0_13], %14 {strides = array<i32>} : memref<8x128xf32, #tpu.memory_space<vmem>>, vector<8x128xf32>,
    } else {
    }
    %c0 = arith.constant 0 : index
    %c0_1 = arith.constant 0 : index
    %3 = vector.load %arg7[%c0, %c0_1] : memref<8x128xf32, #tpu.memory_space<vmem>>, vector<8x128xf32>
    %c0_2 = arith.constant 0 : index
    %c0_3 = arith.constant 0 : index
    %4 = vector.load %arg3[%c0_2, %c0_3] : memref<8x32xf32, #tpu.memory_space<vmem>>, vector<8x32xf32>
    %c0_4 = arith.constant 0 : index
    %c0_5 = arith.constant 0 : index
    %5 = vector.load %arg4[%c0_4, %c0_5] : memref<32x128xf32, #tpu.memory_space<vmem>>, vector<32x128xf32>
    %cst = arith.constant dense<0.000000e+00> : vector<8x128xf32>
    %6 = tpu.matmul %4, %5, %cst {dimension_numbers = #tpu.dot_dimension_numbers<[1], [0], [0], [1], [0, 0, 1, 1], [], []>, precision = #tpu.contract_precision<fp32>} : vector<8x32xf32>, vector<32x128xf32>, vector<8x128xf32> -> vector<8x128xf32>
    %7 = arith.addf %3, %6 : vector<8x128xf32>
    %c0_6 = arith.constant 0 : index
    %c0_7 = arith.constant 0 : index
    %8 = vector.load %arg7[%c0_6, %c0_7] : memref<8x128xf32, #tpu.memory_space<vmem>>, vector<8x128xf32>
    tpu.vector_store %arg7[%c0_6, %c0_7], %7 {strides = array<i32>} : memref<8x128xf32, #tpu.memory_space<vmem>>, vector<8x128xf32>,
    %c0_i32_8 = arith.constant 0 : i32
    %9 = arith.cmpi eq, %arg2, %c0_i32_8 : i32
    %10 = arith.extui %9 : i1 to i32
    %c0_i32_9 = arith.constant 0 : i32
    %11 = arith.cmpi ne, %10, %c0_i32_9 : i32
    scf.if %11 {
      %c0_10 = arith.constant 0 : index
      %c0_11 = arith.constant 0 : index
      %12 = vector.load %arg7[%c0_10, %c0_11] : memref<8x128xf32, #tpu.memory_space<vmem>>, vector<8x128xf32>
      %c0_12 = arith.constant 0 : index
      %c0_13 = arith.constant 0 : index
      %13 = vector.load %arg6[%c0_12, %c0_13] : memref<8x128xf32, #tpu.memory_space<vmem>>, vector<8x128xf32>
      tpu.vector_store %arg6[%c0_12, %c0_13], %12 {strides = array<i32>} : memref<8x128xf32, #tpu.memory_space<vmem>>, vector<8x128xf32>,
    } else {
    }
    return
  }
  func.func @transform_0(%arg0: i32, %arg1: i32, %arg2: i32) -> (i32, i32) {
    %c0_i32 = arith.constant 0 : i32
    return %arg0, %arg2 : i32, i32
  }
  func.func @transform_1(%arg0: i32, %arg1: i32, %arg2: i32) -> (i32, i32) {
    %c0_i32 = arith.constant 0 : i32
    return %arg2, %arg1 : i32, i32
  }
  func.func @transform_2(%arg0: i32, %arg1: i32, %arg2: i32) -> (i32, i32) {
    %c0_i32 = arith.constant 0 : i32
    %c0_i32_0 = arith.constant 0 : i32
    return %c0_i32, %arg1 : i32, i32
  }
  func.func @transform_3(%arg0: i32, %arg1: i32, %arg2: i32) -> (i32, i32) {
    %c0_i32 = arith.constant 0 : i32
    return %arg0, %arg1 : i32, i32
  }
}

</mosaic_0001>

<bundles_post_ra>
// kernel: forward.1
= control target key start
LH: loop header
LB: loop body
LE: loop exit
PB: predicated region body
PF: predicated region fallthrough
CT: control target
= control target key end

     0   :  { %8 = vsyncpa [#allocation4], 0  ;;  %s882_s0 = inlined_call_operand.hbm [shape: f32[8,32], index: 0, kind: input, shape index: {}]   ;;  %s883_s1 = inlined_call_operand.hbm [shape: f32[32,128], index: 1, kind: input, shape index: {}]   ;;  %s884_s2 = inlined_call_operand.vmem [shape: f32[1,128], index: 2, kind: input, shape index: {}]   ;;  %s885_s3 = inlined_call_operand.hbm [shape: f32[8,128], index: 3, kind: output, shape index: {}]  }
   0x1   :  { %9 = vsyncpa [#allocation7], 0 }
   0x2   :  { %10 = vsyncpa [#allocation5], 0  ;;  %s784_s12 = smov [#allocation3]   ;;  %s785_s14 = smov [#allocation6]  }
   0x3   :  { %s17_s13 = sshll.u32 %s784_s12, 4  ;;  %s26_s15 = sshll.u32 %s785_s14, 4  ;;  %s18_s13 = int_to_ptr.vmem [resolvable:$true] %s17_s13  ;;  %s812_s15 = int_to_ptr.vmem [resolvable:$true] %s26_s15 }
   0x4   :  { %s712_s18 = scalar_lea.hbm %s882_s0, 128 }
   0x5   :  { %p713_p0 = scmp.ne.s32.totalorder %s882_s0, %s712_s18  ;;  %p716_p1 = scmp.lt.u32.totalorder %s712_s18, %s882_s0 }
   0x7   :  { %p718_p2 = pnand %p716_p1, %p713_p0 }
   0x9   :  { %721 = shalt.err (!%p718_p2)
}
   0xa   :  { %s722_s23 = scalar_lea.vmem %s18_s13, 128  ;;  %p727_p4 = scmp.lt.s32.totalorder %s18_s13, %s18_s13 }
   0xb   :  { %p723_p3 = scmp.ne.s32.totalorder %s18_s13, %s722_s23  ;;  %p728_p5 = scmp.lt.s32.totalorder %s722_s23, %s722_s23 }
   0xd   :  { %p729_p6 = por %p728_p5, %p727_p4 }
   0xf   :  { %p730_p7 = pnand %p729_p6, %p723_p3 }
  0x11   :  { %733 = shalt.err (!%p730_p7)
}
  0x12   :  { %20 = dma.hbm_to_vmem [thread:$0]  %s882_s0, 128, %s18_s13, [#allocation4]  }
  0x13   :  { %s734_s28 = scalar_lea.hbm %s883_s1, 512 }
  0x14   :  { %p735_p8 = scmp.ne.s32.totalorder %s883_s1, %s734_s28  ;;  %p738_p9 = scmp.lt.u32.totalorder %s734_s28, %s883_s1 }
  0x16   :  { %p740_p10 = pnand %p738_p9, %p735_p8 }
  0x18   :  { %743 = shalt.err (!%p740_p10)
}
  0x19   :  { %s744_s6 = scalar_lea.vmem %s812_s15, 512  ;;  %p749_p12 = scmp.lt.s32.totalorder %s812_s15, %s812_s15 }
  0x1a   :  { %p745_p11 = scmp.ne.s32.totalorder %s812_s15, %s744_s6  ;;  %p750_p13 = scmp.lt.s32.totalorder %s744_s6, %s744_s6 }
  0x1c   :  { %p751_p0 = por %p750_p13, %p749_p12 }
  0x1e   :  { %p752_p1 = pnand %p751_p0, %p745_p11 }
  0x20   :  { %755 = shalt.err (!%p752_p1)
}
  0x21   :  { %s786_s0 = smov 128   ;;  %s787_s7 = smov 8  }
  0x22   :  { %32 = dma.hbm_to_vmem [thread:$0]  %s883_s1, 512, %s812_s15, [#allocation7], %s786_s0, %s786_s0, %s787_s7  }
  0x23   :  { %778 = dma.done.wait [#allocation4], 128  }
  0x24   :  { %779 = vsyncadd [#allocation4], 4294967168 }
  0x25   :  { %780 = dma.done.wait [#allocation7], 512  }
  0x26   :  { %781 = vsyncadd [#allocation7], 4294966784  ;;  %v788_v0 = vmov 0.0|0.0   ;;  %vm789_vm0 = vmmov 0   ;;  %v790_v1 = vmov 0.0   ;;  %vm59_vm1 = vcmask 261120  }
  0x27   :  { %668 = vmatprep.subr.bf16.mxu0 %v788_v0  ;;  %674 = vmatprep.subr.bf16.mxu1 %v788_v0  ;;  %v55_v2 = vld [vmem:[#allocation6] sm:$0xff]  ;;  %v56_v3 = vld [vmem:[#allocation6 + $0x8] sm:$0xff]  ;;  %v57_v4 = vld [vmem:[#allocation6 + $0x10] sm:$0xff]  ;;  %s791_s11 = smov [#allocation8]  }
  0x28   :  { %610 = vmatprep.mubr.msk.f32.mxu0 %vm789_vm0, %v790_v1  ;;  %621 = vmatprep.mubr.msk.f32.mxu1 %vm789_vm0, %v790_v1  ;;  %v64_v5 = vand.u32 4294901760, %v55_v2  ;;  %v67_v6 = vand.u32 4294901760, %v56_v3  ;;  %v58_v7 = vld [vmem:[#allocation6 + $0x18] sm:$0xff]  ;;  %v70_v8 = vand.u32 4294901760, %v57_v4  ;;  %s561_s12 = sshll.u32 %s791_s11, 4  ;;  %s562_s12 = int_to_ptr.vmem [resolvable:$true] %s561_s12 }
  0x29   :  { %v54_v9 = vld [vmem:[#allocation3] sm:$0xff]  ;;  %v73_v10 = vand.u32 4294901760, %v58_v7  ;;  %s756_s13 = scalar_lea.vmem %s562_s12, 128  ;;  %p761_p3 = scmp.lt.s32.totalorder %s562_s12, %s562_s12 }
  0x2a   :  { %v61_v11 = vsel %vm59_vm1, %v54_v9, 0  ;;  %v669_v12 = vpack.c.bf16 %v67_v6, %v64_v5  ;;  %v144_v13 = vsub.f32 %v55_v2, %v64_v5  ;;  %v151_v14 = vsub.f32 %v56_v3, %v67_v6  ;;  %v571_v55 = vld [vmem:[%s884_s2] ss:$0 sm:$0xff]  ;;  %p757_p2 = scmp.ne.s32.totalorder %s562_s12, %s756_s13  ;;  %p762_p4 = scmp.lt.s32.totalorder %s756_s13, %s756_s13 }
  0x2b   :  { %v158_v15 = vsub.f32 %v57_v4, %v70_v8  ;;  %v165_v16 = vsub.f32 %v58_v7, %v73_v10  ;;  %v132_v17 = vand.u32 4294901760, %v61_v11  ;;  %v672_v18 = vpack.c.bf16 %v73_v10, %v70_v8 }
  0x2c   :  { %670 = vmatpush3.bf16.msra.mxu0 %v669_v12  ;;  %v145_v19 = vand.u32 4294901760, %v144_v13  ;;  %v152_v20 = vand.u32 4294901760, %v151_v14  ;;  %v681_v35 = vpack.c.bf16 %v151_v14, %v144_v13  ;;  %p763_p5 = por %p762_p4, %p761_p3 }
  0x2d   :  { %v159_v21 = vand.u32 4294901760, %v158_v15  ;;  %671 = vmatprep.subr.bf16.mxu0 %v788_v0  ;;  %v133_v22 = vsub.f32 %v61_v11, %v132_v17  ;;  %v166_v23 = vand.u32 4294901760, %v165_v16  ;;  %v684_v38 = vpack.c.bf16 %v165_v16, %v158_v15 }
  0x2e   :  { %v146_v24 = vsub.f32 %v144_v13, %v145_v19  ;;  %v153_v25 = vsub.f32 %v151_v14, %v152_v20  ;;  %v693_v39 = vpack.c.bf16 %v152_v20, %v145_v19  ;;  %p764_p6 = pnand %p763_p5, %p757_p2 }
  0x2f   :  { %v160_v26 = vsub.f32 %v158_v15, %v159_v21  ;;  %v134_v27 = vand.u32 4294901760, %v133_v22  ;;  %v167_v28 = vsub.f32 %v165_v16, %v166_v23  ;;  %v696_v40 = vpack.c.bf16 %v166_v23, %v159_v21 }
  0x30   :  { %673 = vmatpush3.bf16.msra.mxu0 %v672_v18  ;;  %v147_v29 = vand.u32 4294901760, %v146_v24  ;;  %v154_v30 = vand.u32 4294901760, %v153_v25 }
  0x31   :  { %v161_v31 = vand.u32 4294901760, %v160_v26  ;;  %680 = vmatprep.subr.bf16.mxu0 %v788_v0  ;;  %v135_v32 = vsub.f32 %v133_v22, %v134_v27  ;;  %v168_v33 = vand.u32 4294901760, %v167_v28 }
  0x32   :  { %v675_v34 = vpack.c.bf16 %v154_v30, %v147_v29 }
  0x33   :  { %v136_v36 = vand.u32 4294901760, %v135_v32  ;;  %v678_v37 = vpack.c.bf16 %v168_v33, %v161_v31 }
  0x34   :  { %676 = vmatpush3.bf16.msra.mxu1 %v675_v34 }
  0x35   :  { %611 = vmatmul.mubr.f32.vlgmr.msra.gmra.mrb[0].mxu0 %v136_v36  ;;  %677 = vmatprep.subr.bf16.mxu1 %v788_v0 }
  0x36   :  { %682 = vmatpush3.bf16.msra.mxu0 %v681_v35  ;;  %632 = vmatprep.mubr.msk.f32.mxu0 %vm789_vm0, %v790_v1 }
  0x37   :  { %683 = vmatprep.subr.bf16.mxu0 %v788_v0 }
  0x38   :  { %679 = vmatpush3.bf16.msra.mxu1 %v678_v37 }
  0x39   :  { %686 = vmatprep.subr.bf16.mxu1 %v788_v0 }
  0x3a   :  { %685 = vmatpush3.bf16.msra.mxu0 %v684_v38 }
  0x3b   :  { %622 = vmatmul.mubr.f32.vlgmr.msra.gmra.mrb[0].mxu1 %v132_v17  ;;  %692 = vmatprep.subr.bf16.mxu0 %v788_v0 }
  0x3c   :  { %688 = vmatpush3.bf16.msra.mxu1 %v669_v12  ;;  %643 = vmatprep.mubr.msk.f32.mxu1 %vm789_vm0, %v790_v1 }
  0x3d   :  { %633 = vmatmul.mubr.f32.vlgmr.msra.gmra.mrb[2].mxu0 %v133_v22  ;;  %689 = vmatprep.subr.bf16.mxu1 %v788_v0 }
  0x3e   :  { %694 = vmatpush3.bf16.msra.mxu0 %v693_v39  ;;  %654 = vmatprep.mubr.msk.f32.mxu0 %vm789_vm0, %v790_v1 }
  0x3f   :  { %695 = vmatprep.subr.bf16.mxu0 %v788_v0 }
  0x40   :  { %691 = vmatpush3.bf16.msra.mxu1 %v672_v18 }
  0x41   :  { %698 = vmatprep.subr.bf16.mxu1 %v788_v0 }
  0x42   :  { %697 = vmatpush3.bf16.msra.mxu0 %v696_v40 }
  0x43   :  { %644 = vmatmul.mubr.f32.vlgmr.msra.gmra.mrb[2].mxu1 %v134_v27 }
  0x44   :  { %700 = vmatpush3.bf16.msra.mxu1 %v669_v12  ;;  %665 = vmatprep.mubr.msk.f32.mxu1 %vm789_vm0, %v790_v1 }
  0x45   :  { %655 = vmatmul.mubr.f32.vlgmr.msra.gmra.mrb[4].mxu0 %v132_v17  ;;  %701 = vmatprep.subr.bf16.mxu1 %v788_v0 }
  0x48   :  { %703 = vmatpush3.bf16.msra.mxu1 %v672_v18 }
  0x4b   :  { %666 = vmatmul.mubr.f32.vlgmr.msra.gmra.mrb[4].mxu1 %v132_v17 }
 0x108   :  { %v138_v41 = vpop.f32.mrb[0].mxu0 }
 0x109   :  { %v612_v42 = vpop.f32.mrb[1].mxu0 }
 0x10e   :  { %v229_v43 = vpop.f32.mrb[0].mxu1 }
 0x10f   :  { %v230_v44 = vadd.f32 %v229_v43, %v138_v41  ;;  %v623_v45 = vpop.f32.mrb[1].mxu1 }
 0x110   :  { %v309_v46 = vpop.f32.mrb[2].mxu0 }
 0x111   :  { %v310_v47 = vadd.f32 %v309_v46, %v230_v44  ;;  %v634_v48 = vpop.f32.mrb[3].mxu0 }
 0x116   :  { %v386_v49 = vpop.f32.mrb[2].mxu1 }
 0x117   :  { %v387_v50 = vadd.f32 %v386_v49, %v310_v47  ;;  %v645_v51 = vpop.f32.mrb[3].mxu1 }
 0x118   :  { %v469_v52 = vpop.f32.mrb[4].mxu0 }
 0x119   :  { %v470_v53 = vadd.f32 %v469_v52, %v387_v50  ;;  %v656_v54 = vpop.f32.mrb[5].mxu0 }
 0x11e   :  { %v544_v56 = vpop.f32.mrb[4].mxu1 }
 0x11f   :  { %v545_v57 = vadd.f32 %v544_v56, %v470_v53  ;;  %v667_v58 = vpop.f32.mrb[5].mxu1 }
 0x121   :  { %v548_v59 = vadd.f32 %v571_v55, %v545_v57 }
 0x123   :  { %554 = vst [vmem:[#allocation8] sm:$0xff] %v548_v59 }
 0x124   :  { %767 = shalt.err (!%p764_p6)
}
 0x125   :  { %s768_s16 = scalar_lea.hbm %s885_s3, 128 }
 0x126   :  { %p769_p7 = scmp.ne.s32.totalorder %s885_s3, %s768_s16  ;;  %p772_p8 = scmp.lt.u32.totalorder %s768_s16, %s885_s3 }
 0x128   :  { %p774_p9 = pnand %p772_p8, %p769_p7 }
 0x12a   :  { %777 = shalt.err (!%p774_p9)
}
 0x12b   :  { %564 = dma.vmem_to_hbm [thread:$0]  %s562_s12, 128, %s885_s3, [#allocation5]  }
 0x12c   :  { %782 = dma.done.wait [#allocation5], 128  }
 0x12d   :  { %783 = vsyncadd [#allocation5], 4294967168 }
 0x12e   :  { %568 = vsyncpa [#allocation4], 1 }
 0x12f   :  { %569 = vsyncpa [#allocation7], 1 }
 0x130   :  { %570 = vsyncpa [#allocation5], 1 }

</bundles_post_ra>
